<compile_context>
chip_gen: v7x
topology: tpu7x:2x2x1
jax: 0.10.0
libtpu: 0.0.40
codegen_flags: <defaults>
</compile_context>

<pallas_src>
import functools

import jax
import jax.numpy as jnp
import numpy as np
from jax import lax
from jax.experimental import pallas as pl
from jax.experimental.pallas import tpu as pltpu

EPS = 1e-8      # gLN epsilon
LANE = 128


def _round_up(v, m):
    return ((v + m - 1) // m) * m


# ------------------------------ in-kernel helpers ----------------------------

def _write_stats(st_ref, z):
    """Write per-tile [sum, sumsq] as one lane-dense (2, LANE) block."""
    s = jnp.sum(z)
    q = jnp.sum(z * z)
    row = lax.broadcasted_iota(jnp.int32, (2, LANE), 0)
    st_ref[0, 0] = jnp.where(row == 0, s, q)


def _dw_tile(yc_ref, yl_ref, yr_ref, n1_ref, dw_ref, alpha, t, *,
             t_true, t_tile, ksize, dilation, masked):
    """gLN1 affine + depthwise 'same' conv + PReLU on one (H, t_tile) tile.

    masked=False is only used on interior tiles whose halos are guaranteed to
    hold real in-sequence data, so the full-width iota/compare/select is skipped.
    Returns z (H, t_tile) in f32.
    """
    hw = dilation * (ksize - 1) // 2
    n1 = n1_ref[0]                                         # (H, 2)
    scale = n1[:, 0:1]
    shift = n1[:, 1:2]

    yc = yc_ref[0]                                         # (H, tT) bf16
    if hw > 0:
        lane = yl_ref.shape[-1]
        yl = yl_ref[0, :, lane - hw:]                      # narrow left halo
        yr = yr_ref[0, :, :hw]                             # narrow right halo
        ext = jnp.concatenate([yl, yc, yr], axis=1)        # (H, tT + 2*hw) bf16
    else:
        ext = yc
    ext = scale * ext.astype(jnp.float32) + shift          # gLN1, 1 FMA / elem

    if masked:
        # Covers: left sequence edge (tile 0), right sequence edge / clamped
        # halo (last tiles) and any T padding.  Interior tiles skip this.
        col = lax.broadcasted_iota(jnp.int32, (1, t_tile + 2 * hw), 1) \
            + (t * t_tile - hw)
        ext = jnp.where((col >= 0) & (col < t_true), ext, 0.0)

    dw = dw_ref[...]                                       # (H, K+1) = [wd | bd]
    z = dw[:, ksize:ksize + 1]                             # bias, broadcasts
    # NOTE: per-tap slices are lane-unaligned; at K<=3 the resulting XLU
    # relayouts are free filler under the DMA (re-check bundles for large K*d).
    for k in range(ksize):                                 # static tap loop
        z = z + dw[:, k:k + 1] * ext[:, k * dilation:k * dilation + t_tile]
    return jnp.where(z > 0, z, alpha * z)                  # PReLU2


# ------------------------------ stage kernels --------------------------------

def _stage1_kernel(x_ref, off_ref, w1_ref, a1_ref, y1_ref, st_ref, *,
                   t_true, t_tile, nt):
    # 1x1 conv (speaker projection pre-folded into off_ref) + PReLU + gLN1 stats.
    # Production Cin >= 128 fills the MXU; toy dims pad (acceptable for tests).
    t = pl.program_id(1)
    y = jnp.dot(w1_ref[...], x_ref[0], preferred_element_type=jnp.float32)
    y = y + off_ref[0]                                     # (H, 1) broadcast
    alpha = a1_ref[0, 0]
    y = jnp.where(y > 0, y, alpha * y)                     # PReLU1

    def finish(yv):
        y1_ref[0] = yv.astype(jnp.bfloat16)
        _write_stats(st_ref, yv)

    if t_true % t_tile != 0:
        # Only the last tile holds T padding -> guard the mask with pl.when.
        @pl.when(t == nt - 1)
        def _():
            col = lax.broadcasted_iota(jnp.int32, (1, t_tile), 1) + t * t_tile
            finish(jnp.where(col < t_true, y, 0.0))

        @pl.when(t < nt - 1)
        def _():
            finish(y)
    else:
        finish(y)


def _stage2_kernel(yc_ref, yl_ref, yr_ref, n1_ref, dw_ref, a2_ref, st_ref, *,
                   t_true, t_tile, nt, ksize, dilation):
    # gLN1 + depthwise conv + PReLU -> gLN2 partial stats only (no y2 writeback).
    t = pl.program_id(1)
    alpha = a2_ref[0, 0]

    def emit(masked):
        z = _dw_tile(yc_ref, yl_ref, yr_ref, n1_ref, dw_ref, alpha, t,
                     t_true=t_true, t_tile=t_tile, ksize=ksize,
                     dilation=dilation, masked=masked)
        if masked and t_true % t_tile != 0:
            colc = lax.broadcasted_iota(jnp.int32, (1, t_tile), 1) + t * t_tile
            z = jnp.where(colc < t_true, z, 0.0)           # keep padding out of stats
        _write_stats(st_ref, z)

    if nt <= 3:
        emit(True)
    else:
        is_edge = jnp.logical_or(t == 0, t >= nt - 2)

        @pl.when(is_edge)
        def _():
            emit(True)

        @pl.when(jnp.logical_not(is_edge))
        def _():
            emit(False)


def _stage3_kernel(x_ref, yc_ref, yl_ref, yr_ref, n1_ref, dw_ref, a2_ref,
                   w3_ref, b3_ref, o_ref, *, t_true, t_tile, nt, ksize, dilation):
    # Recompute depthwise + PReLU from y1 (cheap, avoids the y2 HBM round trip),
    # then the final 1x1 conv with gLN2 folded into w3/b3, plus the residual.
    t = pl.program_id(1)
    alpha = a2_ref[0, 0]

    def emit(masked):
        z = _dw_tile(yc_ref, yl_ref, yr_ref, n1_ref, dw_ref, alpha, t,
                     t_true=t_true, t_tile=t_tile, ksize=ksize,
                     dilation=dilation, masked=masked)
        y = jnp.dot(w3_ref[0], z.astype(jnp.bfloat16),
                    preferred_element_type=jnp.float32)
        o_ref[0] = x_ref[0] + y + b3_ref[0]

    if nt <= 3:
        emit(True)
    else:
        is_edge = jnp.logical_or(t == 0, t >= nt - 2)

        @pl.when(is_edge)
        def _():
            emit(True)

        @pl.when(jnp.logical_not(is_edge))
        def _():
            emit(False)


# --------------------------------- wrapper -----------------------------------

def first_tcn_block(x, ref_emb, params, *, dilation=1, time_tile=None):
    """SpEx+ FirstTCNBlock forward.  x: (B, Cin, T) f32, ref_emb: (B, S)."""
    B, Cin, T = x.shape
    H, ksize = params["wd"].shape
    d = int(dilation)
    assert ksize % 2 == 1, "depthwise kernel size must be odd ('same' padding)"
    hw = d * (ksize - 1) // 2

    if time_tile is None:
        time_tile = min(512, _round_up(T, LANE))       # sweep {512, 1024} in prod
    tT = int(time_tile)
    assert tT % LANE == 0, "time_tile must be a multiple of 128"
    assert hw <= LANE, "dilation too large for the 128-wide halo blocks"
    T_pad = _round_up(T, tT)
    nT = T_pad // tT
    r = tT // LANE
    last_lane_blk = T_pad // LANE - 1

    f32, bf16 = jnp.float32, jnp.bfloat16
    x_f32 = x.astype(f32)
    if T_pad != T:
        x_f32 = jnp.pad(x_f32, ((0, 0), (0, 0), (0, T_pad - T)))
    x_bf = x_f32.astype(bf16)                          # stage-1 input (half reads)

    # Speaker embedding folded into a per-(batch, channel) offset:
    #   W1 @ concat([x, rep(e)]) + b1 == W1x @ x + (W1r @ e + b1)
    off1 = (jnp.einsum("hs,bs->bh", params["w1r"].astype(f32),
                       ref_emb.astype(f32))
            + params["b1"][:, 0][None])[:, :, None]        # (B, H, 1)
    w1 = params["w1x"].astype(bf16)                        # (H, Cin)
    a1 = jnp.asarray(params["a1"], f32).reshape(1, 1)
    a2 = jnp.asarray(params["a2"], f32).reshape(1, 1)

    batch_time = lambda b, t: (b, 0, t)
    per_batch = lambda b, t: (b, 0, 0)
    fixed2 = lambda b, t: (0, 0)
    stats_map = lambda b, t: (b, t, 0, 0)
    left_map = lambda b, t: (b, 0, jnp.maximum(t * r - 1, 0))
    right_map = lambda b, t: (b, 0, jnp.minimum((t + 1) * r, last_lane_blk))
    smem_spec = pl.BlockSpec(memory_space=pltpu.MemorySpace.SMEM)

    def compiler_params(*block_bytes):
        est = 2 * int(sum(block_bytes)) + (4 << 20)        # double buffers + slack
        return pltpu.CompilerParams(
            dimension_semantics=("parallel", "parallel"),
            vmem_limit_bytes=int(min(max(est, 16 << 20), 64 << 20)))

    stats_shape = jax.ShapeDtypeStruct((B, nT, 2, LANE), f32)
    stats_spec = pl.BlockSpec((1, 1, 2, LANE), stats_map)

    # ---- stage 1: 1x1 conv + PReLU + gLN1 partial stats ----------------------
    k1 = functools.partial(_stage1_kernel, t_true=T, t_tile=tT, nt=nT)
    y1, st1 = pl.pallas_call(
        k1,
        grid=(B, nT),
        in_specs=[
            pl.BlockSpec((1, Cin, tT), batch_time),        # x tile (bf16)
            pl.BlockSpec((1, H, 1), per_batch),            # speaker offset
            pl.BlockSpec((H, Cin), fixed2),                # w1x (bf16)
            smem_spec,                                     # prelu1 alpha
        ],
        out_specs=[
            pl.BlockSpec((1, H, tT), batch_time),          # y1 (bf16)
            stats_spec,                                    # per-tile [sum, sumsq]
        ],
        out_shape=[
            jax.ShapeDtypeStruct((B, H, T_pad), bf16),
            stats_shape,
        ],
        compiler_params=compiler_params(Cin * tT * 2, H * 4, H * Cin * 2,
                                        H * tT * 2, 2 * LANE * 4),
    )(x_bf, off1, w1, a1)

    def gln_affine(stats, gamma, beta):
        # Per-tile partials -> per-sample mean/var -> per-(b, c) affine.
        s = jnp.sum(stats[:, :, 0, 0], axis=1)             # (B,)
        q = jnp.sum(stats[:, :, 1, 0], axis=1)
        n = float(H * T)
        mean = s / n
        var = jnp.maximum(q / n - mean * mean, 0.0)
        inv = lax.rsqrt(var + EPS)
        scale = gamma[None, :, 0] * inv[:, None]           # (B, H)
        shift = beta[None, :, 0] - scale * mean[:, None]   # (B, H)
        return scale, shift

    sc1, sh1 = gln_affine(st1, params["g1"], params["be1"])
    n1 = jnp.stack([sc1, sh1], axis=-1).astype(f32)        # (B, H, 2)
    dw = jnp.concatenate([params["wd"], params["bd"]], axis=1).astype(f32)

    # ---- stage 2: gLN1 + depthwise + PReLU -> gLN2 partial stats (no y2) -----
    k2 = functools.partial(_stage2_kernel, t_true=T, t_tile=tT, nt=nT,
                           ksize=ksize, dilation=d)
    st2 = pl.pallas_call(
        k2,
        grid=(B, nT),
        in_specs=[
            pl.BlockSpec((1, H, tT), batch_time),          # y1 center tile
            pl.BlockSpec((1, H, LANE), left_map),          # narrow left halo
            pl.BlockSpec((1, H, LANE), right_map),         # narrow right halo
            pl.BlockSpec((1, H, 2), per_batch),            # gLN1 scale/shift
            pl.BlockSpec((H, ksize + 1), fixed2),          # [wd | bd]
            smem_spec,                                     # prelu2 alpha
        ],
        out_specs=stats_spec,
        out_shape=stats_shape,
        compiler_params=compiler_params(H * tT * 2, 2 * H * LANE * 2, H * 2 * 4,
                                        H * (ksize + 1) * 4, 2 * LANE * 4),
    )(y1, y1, y1, n1, dw, a2)

    sc2, sh2 = gln_affine(st2, params["g2"], params["be2"])
    # gLN2 folded into the final 1x1 conv:  W3 @ (sc*z + sh) + b3.
    w3s = (params["w3"][None] * sc2[:, None, :]).astype(bf16)         # (B,Cin,H)
    b3e = (jnp.einsum("ch,bh->bc", params["w3"].astype(f32), sh2)
           + params["b3"][:, 0][None])[:, :, None].astype(f32)        # (B,Cin,1)

    # ---- stage 3: recompute depthwise+PReLU, folded 1x1 conv + residual ------
    k3 = functools.partial(_stage3_kernel, t_true=T, t_tile=tT, nt=nT,
                           ksize=ksize, dilation=d)
    out = pl.pallas_call(
        k3,
        grid=(B, nT),
        in_specs=[
            pl.BlockSpec((1, Cin, tT), batch_time),        # x (f32 residual)
            pl.BlockSpec((1, H, tT), batch_time),          # y1 center tile
            pl.BlockSpec((1, H, LANE), left_map),          # narrow left halo
            pl.BlockSpec((1, H, LANE), right_map),         # narrow right halo
            pl.BlockSpec((1, H, 2), per_batch),            # gLN1 scale/shift
            pl.BlockSpec((H, ksize + 1), fixed2),          # [wd | bd]
            smem_spec,                                     # prelu2 alpha
            pl.BlockSpec((1, Cin, H), per_batch),          # gLN2-scaled w3 (bf16)
            pl.BlockSpec((1, Cin, 1), per_batch),          # effective bias
        ],
        out_specs=pl.BlockSpec((1, Cin, tT), batch_time),
        out_shape=jax.ShapeDtypeStruct((B, Cin, T_pad), f32),
        # Only alias when x_f32 is a fresh padded copy (never the caller's buffer).
        input_output_aliases=({0: 0} if T_pad != T else {}),
        compiler_params=compiler_params(Cin * tT * 4, Cin * tT * 4, H * tT * 2,
                                        2 * H * LANE * 2, H * 2 * 4,
                                        H * (ksize + 1) * 4, Cin * H * 2, Cin * 4),
    )(x_f32, y1, y1, y1, n1, dw, a2, w3s, b3e)

    return out if T_pad == T else out[:, :, :T]


# ------------------------- deterministic parameters --------------------------

def make_params(key, in_channels, spk_dim, hidden_dim, kernel_size=3):
    ks = jax.random.split(key, 7)
    nrm = lambda k, shape, s: s * jax.random.normal(k, shape, jnp.float32)
    H = hidden_dim
    return dict(
        w1x=nrm(ks[0], (H, in_channels), 0.1),
        w1r=nrm(ks[1], (H, spk_dim), 0.1),
        b1=nrm(ks[2], (H, 1), 0.05),
        a1=jnp.full((1, 1), 0.25, jnp.float32),   # PReLU default init
        g1=jnp.ones((H, 1), jnp.float32),
        be1=jnp.zeros((H, 1), jnp.float32),
        wd=nrm(ks[3], (H, kernel_size), 0.2),
        bd=nrm(ks[4], (H, 1), 0.05),
        a2=jnp.full((1, 1), 0.25, jnp.float32),
        g2=jnp.ones((H, 1), jnp.float32),
        be2=jnp.zeros((H, 1), jnp.float32),
        w3=nrm(ks[5], (in_channels, H), 0.1),
        b3=nrm(ks[6], (in_channels, 1), 0.05),
    )


# ---------------------------- pure-JAX reference -----------------------------

def reference(x, ref_emb, p, dilation=1):
    B, Cin, T = x.shape
    S = ref_emb.shape[1]
    H, K = p["wd"].shape
    d = dilation
    ref_b = jnp.broadcast_to(ref_emb[:, :, None], (B, S, T))
    y = jnp.concatenate([x, ref_b], axis=1)
    w1 = jnp.concatenate([p["w1x"], p["w1r"]], axis=1)
    y = jnp.einsum("hc,bct->bht", w1, y) + p["b1"][None]
    y = jnp.where(y > 0, y, p["a1"][0, 0] * y)

    def gln(v, g, b):
        mean = jnp.mean(v, axis=(1, 2), keepdims=True)
        var = jnp.mean((v - mean) ** 2, axis=(1, 2), keepdims=True)
        return g[None] * (v - mean) * lax.rsqrt(var + EPS) + b[None]

    y = gln(y, p["g1"], p["be1"])
    pad = d * (K - 1) // 2
    yp = jnp.pad(y, ((0, 0), (0, 0), (pad, pad)))
    z = p["bd"][None]
    for k in range(K):
        z = z + p["wd"][None, :, k:k + 1] * yp[:, :, k * d:k * d + T]
    y = jnp.where(z > 0, z, p["a2"][0, 0] * z)
    y = gln(y, p["g2"], p["be2"])
    y = jnp.einsum("ch,bht->bct", p["w3"], y) + p["b3"][None]
    return x + y


# ------------------------------------ main ------------------------------------

if __name__ == "__main__":
    key = jax.random.PRNGKey(0)
    kx1, kx2, kx3, kr, kp = jax.random.split(key, 5)

    B, Cin, S, H = 2, 8, 8, 16            # (batch, in_channels, spk_dim, hidden)
    params = make_params(kp, Cin, S, H)
    ref_emb = jax.random.normal(kr, (B, S), jnp.float32)

    def check(x, dilation, time_tile):
        out = jax.block_until_ready(
            first_tcn_block(x, ref_emb, params, dilation=dilation,
                            time_tile=time_tile))
        assert out.shape == x.shape and out.dtype == jnp.float32
        ref = reference(x, ref_emb, params, dilation=dilation)
        np.testing.assert_allclose(np.asarray(out), np.asarray(ref),
                                   rtol=2e-2, atol=2e-2)

    # A: T=256, two 128-wide tiles -> exercises the inter-tile halo exchange;
    #    same data with the default tile (single 256-wide tile, nT=1).
    x1 = jax.random.normal(kx1, (B, Cin, 256), jnp.float32)
    check(x1, dilation=1, time_tile=128)
    check(x1, dilation=1, time_tile=None)

    # B: ragged T=200 (padded to 256), dilation 2 -> padding masks + dilated halos.
    x2 = jax.random.normal(kx2, (B, Cin, 200), jnp.float32)
    check(x2, dilation=2, time_tile=128)

    # C: T=600 over five 128-wide tiles -> interior tiles take the unmasked
    #    pl.when fast path; last tile is ragged.
    x3 = jax.random.normal(kx3, (B, Cin, 600), jnp.float32)
    check(x3, dilation=1, time_tile=128)

    print("KERNEL_OK")
</pallas_src>

<mosaic_0001>
module attributes {stable_mosaic.version = 11 : i64} {
  func.func @_stage1_kernel(%arg0: i32, %arg1: i32, %arg2: memref<1x8x128xbf16, #tpu.memory_space<vmem>>, %arg3: memref<1x16x1xf32, #tpu.memory_space<vmem>>, %arg4: memref<16x8xbf16, #tpu.memory_space<vmem>>, %arg5: memref<1x1xf32, #tpu.memory_space<smem>>, %arg6: memref<1x16x128xbf16, #tpu.memory_space<vmem>>, %arg7: memref<1x1x2x128xf32, #tpu.memory_space<vmem>>) attributes {dimension_semantics = [#tpu.dimension_semantics<parallel>, #tpu.dimension_semantics<parallel>], iteration_bounds = array<i64: 2, 2>, scalar_prefetch = 0 : i64, scratch_operands = 0 : i64, tpu.core_type = #tpu.core_type<tc>, window_params = [{transform_indices = @transform_0, window_bounds = array<i64: 1, 8, 128>}, {transform_indices = @transform_1, window_bounds = array<i64: 1, 16, 1>}, {pipeline_mode = #tpu.pipeline_mode<synchronous>, transform_indices = @transform_2, window_bounds = array<i64: 16, 8>}, {transform_indices = @transform_3, window_bounds = array<i64: 1, 1>}, {transform_indices = @transform_4, window_bounds = array<i64: 1, 16, 128>}, {transform_indices = @transform_5, window_bounds = array<i64: 1, 1, 2, 128>}]} {
    %c0 = arith.constant 0 : index
    %c0_0 = arith.constant 0 : index
    %0 = vector.load %arg4[%c0, %c0_0] : memref<16x8xbf16, #tpu.memory_space<vmem>>, vector<16x8xbf16>
    %c0_1 = arith.constant 0 : index
    %c0_2 = arith.constant 0 : index
    %c0_3 = arith.constant 0 : index
    %1 = vector.load %arg2[%c0_1, %c0_2, %c0_3] : memref<1x8x128xbf16, #tpu.memory_space<vmem>>, vector<1x8x128xbf16>
    %2 = vector.shape_cast %1 : vector<1x8x128xbf16> to vector<8x128xbf16>
    %cst = arith.constant dense<0.000000e+00> : vector<16x128xf32>
    %3 = tpu.matmul %0, %2, %cst {dimension_numbers = #tpu.dot_dimension_numbers<[1], [0], [0], [1], [0, 0, 1, 1], [], []>} : vector<16x8xbf16>, vector<8x128xbf16>, vector<16x128xf32> -> vector<16x128xf32>
    %c0_4 = arith.constant 0 : index
    %c0_5 = arith.constant 0 : index
    %c0_6 = arith.constant 0 : index
    %4 = vector.load %arg3[%c0_4, %c0_5, %c0_6] : memref<1x16x1xf32, #tpu.memory_space<vmem>>, vector<1x16x1xf32>
    %5 = vector.shape_cast %4 : vector<1x16x1xf32> to vector<16x1xf32>
    %6 = vector.broadcast %5 : vector<16x1xf32> to vector<16x128xf32>
    %7 = arith.addf %3, %6 : vector<16x128xf32>
    %c0_7 = arith.constant 0 : index
    %c0_8 = arith.constant 0 : index
    %8 = memref.load %arg5[%c0_7, %c0_8] : memref<1x1xf32, #tpu.memory_space<smem>>
    %cst_9 = arith.constant 0.000000e+00 : f32
    %9 = vector.broadcast %cst_9 : f32 to vector<16x128xf32>
    %10 = arith.cmpf ogt, %7, %9 : vector<16x128xf32>
    %11 = vector.broadcast %8 : f32 to vector<16x128xf32>
    %12 = arith.mulf %11, %7 : vector<16x128xf32>
    %13 = arith.select %10, %7, %12 : vector<16x128xi1>, vector<16x128xf32>
    %14 = arith.truncf %13 : vector<16x128xf32> to vector<16x128xbf16>
    %c0_10 = arith.constant 0 : index
    %c0_11 = arith.constant 0 : index
    %c0_12 = arith.constant 0 : index
    %15 = vector.load %arg6[%c0_10, %c0_11, %c0_12] : memref<1x16x128xbf16, #tpu.memory_space<vmem>>, vector<1x16x128xbf16>
    %16 = vector.shape_cast %15 : vector<1x16x128xbf16> to vector<16x128xbf16>
    %17 = vector.shape_cast %14 : vector<16x128xbf16> to vector<1x16x128xbf16>
    tpu.vector_store %arg6[%c0_10, %c0_11, %c0_12], %17 {strides = array<i32>} : memref<1x16x128xbf16, #tpu.memory_space<vmem>>, vector<1x16x128xbf16>,
    %18 = vector.shape_cast %13 : vector<16x128xf32> to vector<1x16x128xf32>
    %cst_13 = arith.constant dense<0.000000e+00> : vector<1xf32>
    %19 = vector.multi_reduction <add>, %18, %cst_13 [1, 2] : vector<1x16x128xf32> to vector<1xf32>
    %20 = vector.shape_cast %19 : vector<1xf32> to vector<1x1x1xf32>
    %21 = vector.extract %20[0, 0, 0] : f32 from vector<1x1x1xf32>
    %22 = arith.mulf %13, %13 : vector<16x128xf32>
    %23 = vector.shape_cast %22 : vector<16x128xf32> to vector<1x16x128xf32>
    %cst_14 = arith.constant dense<0.000000e+00> : vector<1xf32>
    %24 = vector.multi_reduction <add>, %23, %cst_14 [1, 2] : vector<1x16x128xf32> to vector<1xf32>
    %25 = vector.shape_cast %24 : vector<1xf32> to vector<1x1x1xf32>
    %26 = vector.extract %25[0, 0, 0] : f32 from vector<1x1x1xf32>
    %27 = tpu.iota {dimensions = array<i32: 0>} : vector<2x128xi32>
    %c0_i32 = arith.constant 0 : i32
    %28 = vector.broadcast %c0_i32 : i32 to vector<2x128xi32>
    %29 = arith.cmpi eq, %27, %28 : vector<2x128xi32>
    %30 = vector.broadcast %21 : f32 to vector<2x128xf32>
    %31 = vector.broadcast %26 : f32 to vector<2x128xf32>
    %32 = arith.select %29, %30, %31 : vector<2x128xi1>, vector<2x128xf32>
    %c0_15 = arith.constant 0 : index
    %c0_16 = arith.constant 0 : index
    %c0_17 = arith.constant 0 : index
    %c0_18 = arith.constant 0 : index
    %33 = vector.load %arg7[%c0_15, %c0_16, %c0_17, %c0_18] : memref<1x1x2x128xf32, #tpu.memory_space<vmem>>, vector<1x1x2x128xf32>
    %34 = vector.shape_cast %33 : vector<1x1x2x128xf32> to vector<2x128xf32>
    %35 = vector.shape_cast %32 : vector<2x128xf32> to vector<1x1x2x128xf32>
    tpu.vector_store %arg7[%c0_15, %c0_16, %c0_17, %c0_18], %35 {strides = array<i32>} : memref<1x1x2x128xf32, #tpu.memory_space<vmem>>, vector<1x1x2x128xf32>,
    return
  }
  func.func @transform_0(%arg0: i32, %arg1: i32) -> (i32, i32, i32) {
    %c0_i32 = arith.constant 0 : i32
    %c0_i32_0 = arith.constant 0 : i32
    return %arg0, %c0_i32, %arg1 : i32, i32, i32
  }
  func.func @transform_1(%arg0: i32, %arg1: i32) -> (i32, i32, i32) {
    %c0_i32 = arith.constant 0 : i32
    %c0_i32_0 = arith.constant 0 : i32
    %c0_i32_1 = arith.constant 0 : i32
    return %arg0, %c0_i32, %c0_i32_0 : i32, i32, i32
  }
  func.func @transform_2(%arg0: i32, %arg1: i32) -> (i32, i32) {
    %c0_i32 = arith.constant 0 : i32
    %c0_i32_0 = arith.constant 0 : i32
    %c0_i32_1 = arith.constant 0 : i32
    return %c0_i32, %c0_i32_0 : i32, i32
  }
  func.func @transform_3(%arg0: i32, %arg1: i32) -> (i32, i32) {
    %c0_i32 = arith.constant 0 : i32
    %c0_i32_0 = arith.constant 0 : i32
    %c0_i32_1 = arith.constant 0 : i32
    return %c0_i32, %c0_i32_0 : i32, i32
  }
  func.func @transform_4(%arg0: i32, %arg1: i32) -> (i32, i32, i32) {
    %c0_i32 = arith.constant 0 : i32
    %c0_i32_0 = arith.constant 0 : i32
    return %arg0, %c0_i32, %arg1 : i32, i32, i32
  }
  func.func @transform_5(%arg0: i32, %arg1: i32) -> (i32, i32, i32, i32) {
    %c0_i32 = arith.constant 0 : i32
    %c0_i32_0 = arith.constant 0 : i32
    %c0_i32_1 = arith.constant 0 : i32
    return %arg0, %arg1, %c0_i32, %c0_i32_0 : i32, i32, i32, i32
  }
}

</mosaic_0001>

<bundles_post_ra>
// kernel: tpu_custom_call.1
= control target key start
LH: loop header
LB: loop body
LE: loop exit
PB: predicated region body
PF: predicated region fallthrough
CT: control target
= control target key end

     0   :  { %s1038_s0 = inlined_call_operand.vmem [shape: bf16[2,8,256], index: 0, kind: input, shape index: {}]   ;;  %s1039_s1 = inlined_call_operand.vmem [shape: f32[2,16,1], index: 1, kind: input, shape index: {}]   ;;  %s1040_s2 = inlined_call_operand.vmem [shape: bf16[16,8], index: 2, kind: input, shape index: {}]   ;;  %s1041_s3 = inlined_call_operand.<no memory space> [shape: f32[1,1], index: 3, kind: input, shape index: {}]   ;;  %s1042_s4 = inlined_call_operand.hbm [shape: bf16[2,16,256], index: 4, kind: output, shape index: {0}]   ;;  %s1043_s5 = inlined_call_operand.hbm [shape: f32[2,2,2,128], index: 5, kind: output, shape index: {1}]  }
   0x1   :  { %11 = sst [smem:[#allocation2]] %s1041_s3 }
   0x2   :  { %12 = vsyncpa [#allocation4], 0 }
   0x3   :  { %14 = vsyncpa [#allocation4 + $0x1], 0 }
   0x4   :  { %15 = vsyncpa [#allocation6], 0 }
   0x5   :  { %17 = vsyncpa [#allocation6 + $0x1], 0  ;;  %s857_s20 = smov 0   ;;  %s859_s21 = smov 0  }
   0x6   :  { %s861_s22 = smov 0   ;;  %s863_s23 = smov 0  }
   0x7   :  { %s865_s24 = smov 0   ;;  %s867_s25 = smov 0  }
   0x8   :  { %s869_s26 = smov 0   ;;  %s871_s27 = smov 0  }
   0x9 LB: > { %s561_s3 = sadd.s32 4294967295, %s814_s27   ;;  %s562_s28 = sadd.s32 4294967294, %s814_s27   ;;  %s814_s27 = sphi %s871_s27, %s23_s27   ;;  %s810_s26 = sphi %s869_s26, %s1055_s26   ;;  %s806_s25 = sphi %s867_s25, %s1054_s25   ;;  %s802_s24 = sphi %s865_s24, %s1053_s24   ;;  %s798_s23 = sphi %s863_s23, %s1052_s23   ;;  %s794_s22 = sphi %s861_s22, %s1051_s22   ;;  %s790_s21 = sphi %s859_s21, %s1050_s21   ;;  %s786_s20 = sphi %s857_s20, %s1049_s20  }
   0xa   : > { %s32_s29 = sadd.s32 1, %s806_s25  ;;  %s35_s30 = sadd.s32 1, %s810_s26 }
   0xb   : > { %p33_p0 = scmp.ge.s32.totalorder %s32_s29, 2  ;;  %p150_p1 = scmp.ne.s32.totalorder %s794_s22, %s790_s21 }
   0xc   : > { %p151_p2 = scmp.eq.s32.totalorder %s561_s3, 3  ;;  %p156_p5 = scmp.ne.s32.totalorder %s790_s21, %s786_s20 }
   0xd   : > { %s1057_s29 = smov (%p33_p0, %s32_s29), 0  ;;  %s1059_s30 = smov (!%p33_p0, %s35_s30), %s810_s26 }
   0xe   : > { %s136_s6 = ssub.s32 %s806_s25, %s1057_s29  ;;  %p908_p3 = por %p151_p2, %p150_p1 }
   0xf   : > { %p37_p4 = scmp.ge.s32.totalorder %s1059_s30, 2  ;;  %p157_p6 = scmp.eq.s32.totalorder %s562_s28, 3 }
  0x10   : > { %p565_p7 = scmp.ge.s32.totalorder %s814_s27, 1  ;;  %p228_p9 = scmp.lt.s32.totalorder %s814_s27, 5 }
  0x11   : > { %s1061_s30 = smov (%p37_p4, %s1059_s30), 0  ;;  %p917_p8 = por %p157_p6, %p156_p5 }
  0x12   : > { %1046 = sst [smem:[#allocation9_spill]] %s1061_s30  ;;  %s135_s9 = ssub.s32 %s810_s26, %s1061_s30 }
  0x13   : > { %s140_s10 = sadd.s32 1, %s794_s22  ;;  %s137_s11 = sor.u32 %s136_s6, %s135_s9 }
  0x14   : > { %p229_p10 = pnand %p565_p7, %p228_p9  ;;  %p138_p11 = scmp.eq.s32.totalorder %s137_s11, 0 }
  0x15   : > { %p269_p12 = scmp.lt.s32.totalorder (!%p229_p10), %s802_s24, 1  ;;  %p271_p13 = scmp.lt.s32.totalorder (!%p229_p10), %s798_s23, 1  ;;  %v816_v0 = vmov (!%p229_p10), 0.0   ;;  %vm817_vm0 = vmmov (!%p229_p10), 0   ;;  %v818_v1 = vmov (!%p229_p10), 0   ;;  %vm307_vm1 = vcmask (!%p229_p10), 1043456  }
  0x16   : > { %s926_s12 = scalar_select %p138_p11, %s794_s22, %s140_s10  }
  0x17   : > { %232 = sbr.rel (%p229_p10) target bundleno = 486 (0x1e6), region = 36  ;;  %594 = vmatprep.subr.bf16.mxu0 (!%p229_p10), %v816_v0  ;;  %596 = vmatprep.mubr.msk.bf16.mxu0 (!%p229_p10), %vm817_vm0, %v816_v0  ;;  %v687_v6 = vld [vmem:[%s1040_s2] sm:$0xff] (!%p229_p10)   ;;  %vm303_vm2 = vcmask (!%p229_p10), 64512   ;;  %s819_s11 = smov (!%p229_p10), [#allocation3]  }
  0x18   : > { %686 = vset.pattern.permute.xlu0 (!%p229_p10), %v818_v1 }
  0x1e   : > { %s270_s13 = scalar_select %p269_p12, %s802_s24, 1 }
  0x1f   : > { %s272_s14 = scalar_select %p271_p13, %s798_s23, 1 }
  0x20   : > { %s568_s15 = sshll.u32 %s270_s13, 1  ;;  %s584_s16 = sshll.u32 %s270_s13, 4 }
  0x21   : > { %s274_s17 = sadd.s32 %s568_s15, %s272_s14  ;;  %s281_s3 = scalar_lea.vmem %s1039_s1, %s584_s16 }
  0x22   : > { %s569_s28 = sshll.u32 %s274_s17, 2  ;;  %v286_v2 = vld [vmem:[%s281_s3] sm:$0xff]  ;;  %v287_v4 = vld [vmem:[%s281_s3 + $0x8] sm:$0xff]  ;;  %s352_s13 = sld [smem:[#allocation2]] }
  0x23   : > { %s276_s10 = scalar_lea.vmem %s1038_s0, %s569_s28  ;;  %290 = vperm.xlu0 %686, %v286_v2   ;;  %s942_s14 = sand.u32 1, %s790_s21  }
  0x24   : > { %v285_v3 = vld [vmem:[%s276_s10] sm:$0xf]  ;;  %s566_s30 = sshll.u32 %s942_s14, 3  ;;  %s578_s17 = sshll.u32 %s802_s24, 2 }
  0x25   : > { %v309_v5 = vsel %vm307_vm1, %v285_v3, 0  ;;  %s261_s15 = scalar_lea.vmem [#allocation3], %s566_s30  ;;  %s416_s18 = sadd.s32 %s798_s23, %s578_s17 }
  0x26   : > { %595 = vmatpush3.bf16.msra.mxu0 %v309_v5  ;;  %s419_s16 = sshll.u32 %s261_s15, 4  ;;  %s579_s19 = sshll.u32 %s416_s18, 6  ;;  %s947_s16 = int_to_ptr.vmem [resolvable:$true] %s419_s16 }
  0x27   : > { %295 = vperm.xlu0 %686, %v287_v4   ;;  %s952_s6 = scalar_lea.hbm %s1042_s4, %s579_s19  ;;  %s400_s9 = scalar_lea.sflag [#allocation4], %s942_s14 }
  0x28   : > { %v355_v9 = vstv %s352_s13  ;;  %s688_s10 = scalar_lea.vmem %s947_s16, 128  ;;  %s692_s13 = sshll.u32 %s819_s11, 4  ;;  %s693_s13 = int_to_ptr.vmem [resolvable:$false] %s692_s13 }
  0x29   : > { %597 = vmatmul.mubr.msk.bf16.vlgmr.msra.gmra.mrb[0].mxu0 %vm303_vm2, %v687_v6  ;;  %p689_p0 = scmp.ne.s32.totalorder %s947_s16, %s688_s10  ;;  %s694_s30 = scalar_lea.vmem %s693_s13, 256 }
  0x2a   : > { %p695_p4 = scmp.lt.s32.totalorder %s947_s16, %s693_s13  ;;  %p696_p5 = scmp.lt.s32.totalorder %s694_s30, %s688_s10 }
  0x2b   : > { %p690_p1 = pnand %p689_p0, %p908_p3 }
  0x2c   : > { %p697_p6 = por %p696_p5, %p695_p4 }
  0x2d   : > { %p691_p2 = pneg %p690_p1 }
  0x2f   : > { %p698_p7 = pnand %p697_p6, %p691_p2 }
  0xa2   : > { %v291_v7 = vpop.permute.xlu0 %290 }
  0xa6   : > { %v296_v12 = vpop.permute.xlu0 %295 }
  0xfc   : > { %v345_v8 = vpop.f32.mrb[0].mxu0 }
  0xfd   : > { %v346_v10 = vadd.f32 %v345_v8, %v291_v7  ;;  %v598_v11 = vpop.f32.mrb[1].mxu0 }
  0xfe   : > { %v348_v13 = vpop.f32.mrb[2].mxu0 }
  0xff   : > { %v356_v14 = vmul.f32 %v355_v9, %v346_v10  ;;  %v349_v15 = vadd.f32 %v348_v13, %v296_v12  ;;  %v599_v16 = vpop.f32.mrb[3].mxu0  ;;  %vm353_vm3 = vcmp.gt.f32.partialorder %v346_v10, 0.0 }
 0x101   : > { %v357_v17 = vmul.f32 %v355_v9, %v349_v15  ;;  %vm354_vm4 = vcmp.gt.f32.partialorder %v349_v15, 0.0  ;;  %v358_v18 = vsel %vm353_vm3, %v346_v10, %v356_v14 }
 0x102   : > { %v380_v22 = vmul.f32 %v358_v18, %v358_v18 }
 0x103   : > { %v359_v19 = vsel %vm354_vm4, %v349_v15, %v357_v17 }
 0x104   : > { %v370_v20 = vadd.f32 %v359_v19, %v358_v18  ;;  %v590_v21 = vpack.c.bf16 %v359_v19, %v358_v18  ;;  %v381_v23 = vmul.f32 %v359_v19, %v359_v19 }
 0x106   : > { %371 = vadd.xlane.f32.xlu1 %v370_v20  ;;  %591 = vst [vmem:[%s261_s15] sm:$0xff] %v590_v21   ;;  %v382_v24 = vadd.f32 %v381_v23, %v380_v22 }
 0x10a   : > { %383 = vadd.xlane.f32.xlu1 %v382_v24 }
 0x10b   : > { %701 = shalt.err (!%p698_p7)
}
 0x10c   : > { %s702_s15 = scalar_lea.hbm %s952_s6, 128  ;;  %s706_s19 = scalar_lea.hbm %s1042_s4, 512 }
 0x10d   : > { %p703_p9 = scmp.ne.s32.totalorder %s952_s6, %s702_s15  ;;  %p707_p12 = scmp.lt.u32.totalorder %s952_s6, %s1042_s4 }
 0x10e   : > { %p708_p13 = scmp.lt.u32.totalorder %s706_s19, %s702_s15  ;;  %p710_p1 = scmp.lt.u32.totalorder %s702_s15, %s952_s6 }
 0x10f   : > { %p704_p10 = pnand %p703_p9, %p908_p3 }
 0x110   : > { %p709_p0 = por %p708_p13, %p707_p12 }
 0x111   : > { %p705_p11 = pneg %p704_p10 }
 0x112   : > { %p711_p2 = por %p710_p1, %p709_p0 }
 0x114   : > { %p712_p4 = pnand %p711_p2, %p705_p11 }
 0x116   : > { %715 = shalt.err (!%p712_p4)
}
 0x117   : > { %s820_s10 = smov 64   ;;  %s821_s11 = smov 128   ;;  %v392_v39 = vlaneseq }
 0x118   : > { %s822_s13 = smov 4  }
 0x119   : > { %604 = dma.vmem_to_hbm [thread:$0]  (%p908_p3), %s947_s16, 128, %s952_s6, %s400_s9, %s820_s10, %s821_s11, %s822_s13   ;;  %v393_v40 = vshrl.u32 %v392_v39, 7 }
 0x11a   : > { %s580_s16 = sshll.u32 %s802_s24, 1  ;;  %s567_s6 = sshll.u32 %s942_s14, 1 }
 0x11b   : > { %s433_s9 = sadd.s32 %s798_s23, %s580_s16  ;;  %s268_s17 = scalar_lea.vmem [#allocation5], %s567_s6  ;;  %vm394_vm5 = vcmp.eq.s32.totalorder %v393_v40, 0 }
 0x11c   : > { %s581_s30 = sshll.u32 %s433_s9, 5  ;;  %s437_s18 = sshll.u32 %s268_s17, 4  ;;  %s986_s18 = int_to_ptr.vmem [resolvable:$true] %s437_s18 }
 0x11d   : > { %s984_s10 = scalar_lea.hbm %s1043_s5, %s581_s30  ;;  %s405_s23 = scalar_lea.sflag [#allocation6], %s942_s14 }
 0x11e   : > { %s716_s24 = scalar_lea.vmem %s986_s18, 32  ;;  %s823_s11 = smov [#allocation5]  }
 0x11f   : > { %p717_p5 = scmp.ne.s32.totalorder %s986_s18, %s716_s24  ;;  %s720_s13 = sshll.u32 %s823_s11, 4  ;;  %s721_s13 = int_to_ptr.vmem [resolvable:$false] %s720_s13 }
 0x120   : > { %s722_s16 = scalar_lea.vmem %s721_s13, 64  ;;  %p723_p9 = scmp.lt.s32.totalorder %s986_s18, %s721_s13 }
 0x121   : > { %p718_p6 = pnand %p717_p5, %p908_p3  ;;  %p724_p10 = scmp.lt.s32.totalorder %s722_s16, %s716_s24 }
 0x123   : > { %p719_p7 = pneg %p718_p6  ;;  %p725_p11 = por %p724_p10, %p723_p9 }
 0x125   : > { %p726_p12 = pnand %p725_p11, %p719_p7 }
 0x193   : > { %v372_v25 = vpop.xlane.xlu1 %371 }
 0x194   : > { %v373_v26 = vrot.slane %v372_v25, 4 }
 0x196   : > { %v374_v27 = vadd.f32 %v373_v26, %v372_v25 }
 0x197   : > { %v384_v28 = vpop.xlane.xlu1 %383 }
 0x198   : > { %v375_v29 = vrot.slane %v374_v27, 2  ;;  %v385_v30 = vrot.slane %v384_v28, 4 }
 0x19a   : > { %v386_v31 = vadd.f32 %v385_v30, %v384_v28  ;;  %v376_v32 = vadd.f32 %v375_v29, %v374_v27 }
 0x19c   : > { %v387_v33 = vrot.slane %v386_v31, 2  ;;  %v377_v34 = vrot.slane %v376_v32, 1 }
 0x19e   : > { %v388_v35 = vadd.f32 %v387_v33, %v386_v31  ;;  %v378_v36 = vadd.f32 %v377_v34, %v376_v32 }
 0x1a0   : > { %600 = vpush %v378_v36  ;;  %v389_v37 = vrot.slane %v388_v35, 1 }
 0x1a2   : > { %v390_v38 = vadd.f32 %v389_v37, %v388_v35 }
 0x1a4   : > { %602 = vpush %v390_v38 }
 0x1d1   : > { %s601_s15 = spop %600 }
 0x1d2   : > { %v395_v41 = vstv %s601_s15 }
 0x1d5   : > { %s603_s19 = spop %602 }
 0x1d6   : > { %v396_v42 = vstv %s603_s19 }
 0x1d7   : > { %v397_v43 = vsel %vm394_vm5, %v395_v41, %v396_v42 }
 0x1d8   : > { %398 = vst [vmem:[%s268_s17] sm:$0x3] %v397_v43 }
 0x1d9   : > { %729 = shalt.err (!%p726_p12)
}
 0x1da   : > { %s730_s14 = scalar_lea.hbm %s984_s10, 32  ;;  %s734_s30 = scalar_lea.hbm %s1043_s5, 128 }
 0x1db   : > { %p731_p13 = scmp.ne.s32.totalorder %s984_s10, %s730_s14  ;;  %p735_p2 = scmp.lt.u32.totalorder %s984_s10, %s1043_s5 }
 0x1dc   : > { %p736_p4 = scmp.lt.u32.totalorder %s734_s30, %s730_s14  ;;  %p738_p6 = scmp.lt.u32.totalorder %s730_s14, %s984_s10 }
 0x1dd   : > { %p732_p0 = pnand %p731_p13, %p908_p3 }
 0x1de   : > { %p737_p5 = por %p736_p4, %p735_p2 }
 0x1df   : > { %p733_p1 = pneg %p732_p0 }
 0x1e0   : > { %p739_p7 = por %p738_p6, %p737_p5 }
 0x1e2   : > { %p740_p9 = pnand %p739_p7, %p733_p1 }
 0x1e4   : > { %743 = shalt.err (!%p740_p9)
}
 0x1e5   : > { %605 = dma.vmem_to_hbm [thread:$0]  (%p908_p3), %s986_s18, 32, %s984_s10, %s405_s23  }
 0x1e6 PF: > { %p615_p10 = scmp.ge.s32.totalorder %s814_s27, 2  ;;  %s449_s19 = sand.u32 1, %s786_s20  }
 0x1e7   : > { %s450_s3 = scalar_lea.sflag [#allocation4], %s449_s19 }
 0x1e8   : > { %p609_p11 = pnand %p615_p10, %p917_p8 }
 0x1ea   : > { %777 = dma.done.wait (!%p609_p11), %s450_s3, 128  }
 0x1eb   : > { %779 = vsyncadd (!%p609_p11), %s450_s3, 4294967168  ;;  %s459_s28 = scalar_lea.sflag [#allocation6], %s449_s19 }
 0x1ec   : > { %781 = dma.done.wait (!%p609_p11), %s459_s28, 32  }
 0x1ed   : > { %783 = vsyncadd (!%p609_p11), %s459_s28, 4294967264  ;;  %s23_s27 = sadd.s32 1, %s814_s27   ;;  %s1048_s7 = sld [smem:[#allocation9_spill]] }
 0x1ee   : > { %p20_p12 = scmp.ge.s32.totalorder %s23_s27, 6   ;;  %s1049_s20 = smov %s790_s21 }
 0x1ef   : > { %s1050_s21 = smov %s794_s22  ;;  %s1051_s22 = smov %s926_s12 }
 0x1f0   : > { %s1052_s23 = smov %s806_s25  ;;  %s1053_s24 = smov %s810_s26 }
 0x1f1   : > { %s1054_s25 = smov %s1057_s29  ;;  %22 = sbr.rel (!%p20_p12) target bundleno = 9 (0x9), region = 91 }
 0x1f3   : > { %s1055_s26 = smov %s1048_s7 }
 0x1f8   :  { %464 = vsyncpa [#allocation4], 1 }
 0x1f9   :  { %466 = vsyncpa [#allocation4 + $0x1], 1 }
 0x1fa   :  { %467 = vsyncpa [#allocation6], 1 }
 0x1fb   :  { %469 = vsyncpa [#allocation6 + $0x1], 1 }

</bundles_post_ra>
